<compile_context>
chip_gen: v5e
topology: v5e:2x2
jax: 0.10.0
libtpu: 0.0.40
codegen_flags: <defaults>
</compile_context>

<pallas_src>
import jax
import jax.numpy as jnp
from jax.experimental import pallas as pl
from jax.experimental.pallas import tpu as pltpu


def _round_up(x, m):
    return ((x + m - 1) // m) * m


def _cdiv(a, b):
    return (a + b - 1) // b


def qwen_mlp_head_kernel(x_ref, w1_ref, b1_ref, w2_ref, b2_ref,
                         w3_ref, b3_ref, out_ref):
    # x arrives in its storage dtype (f32 on the zero-copy path, bf16 on the
    # fallback path); cast to bf16 for the MXU here.
    x = x_ref[...].astype(jnp.bfloat16)

    # Linear(H, M) + ReLU.  bf16 MXU operands, f32 accumulation, f32 epilogue.
    h1 = jnp.dot(x, w1_ref[...], preferred_element_type=jnp.float32)
    h1 = jnp.maximum(h1 + b1_ref[...], 0.0).astype(jnp.bfloat16)

    # Linear(M, M) + ReLU.
    h2 = jnp.dot(h1, w2_ref[...], preferred_element_type=jnp.float32)
    h2 = jnp.maximum(h2 + b2_ref[...], 0.0).astype(jnp.bfloat16)

    # Linear(M, L).  Padded label columns carry a finite -1e9 bias so they get
    # zero softmax mass (safe even if logits were ever cast to bf16).
    logits = jnp.dot(h2, w3_ref[...], preferred_element_type=jnp.float32)
    logits = logits + b3_ref[...]

    # Softmax over the (padded, lane-dense) label axis.
    m = jnp.max(logits, axis=-1, keepdims=True)
    e = jnp.exp(logits - m)
    inv = pl.reciprocal(jnp.sum(e, axis=-1, keepdims=True), approx=True)
    out_ref[...] = (e * inv).astype(out_ref.dtype)


def prepare_params(params, seq_len):
    """Pad + bf16-cast the MLP-head weights ONCE (hoisted out of the per-call
    path).  seq_len decides the lane width of the CLS read when hidden_dim is
    not a 128 multiple (extra lanes are absorbed by zero weight rows)."""
    w1, b1, w2, b2, w3, b3 = params
    H, M = w1.shape
    L = w3.shape[1]

    Mp = _round_up(M, 128)
    Lp = _round_up(L, 128)
    # Lane width of the x read from the flattened [B, S*H] activations.
    Hx = H if H % 128 == 0 else _round_up(H, 128)
    if Hx > seq_len * H:          # tiny-model corner case: read the whole row
        Hx = seq_len * H

    w1_p = jnp.zeros((Hx, Mp), jnp.bfloat16).at[:H, :M].set(w1.astype(jnp.bfloat16))
    w2_p = jnp.zeros((Mp, Mp), jnp.bfloat16).at[:M, :M].set(w2.astype(jnp.bfloat16))
    w3_p = jnp.zeros((Mp, Lp), jnp.bfloat16).at[:M, :L].set(w3.astype(jnp.bfloat16))
    b1_p = jnp.zeros((1, Mp), jnp.float32).at[:, :M].set(b1.reshape(1, M))
    b2_p = jnp.zeros((1, Mp), jnp.float32).at[:, :M].set(b2.reshape(1, M))
    # Padded label columns get a large-but-finite negative bias -> exp() == 0.
    b3_p = jnp.full((1, Lp), -1e9, jnp.float32).at[:, :L].set(b3.reshape(1, L))

    dims = dict(H=H, M=M, L=L, Hx=Hx, Mp=Mp, Lp=Lp)
    return (w1_p, b1_p, w2_p, b2_p, w3_p, b3_p), dims


def qwen_mlp_head(sequence_output, prepared_params, dims, *, block_b=512):
    """sequence_output: [B, S, H] f32 backbone activations.
    Returns softmax probs [B, L] f32."""
    w1_p, b1_p, w2_p, b2_p, w3_p, b3_p = prepared_params
    B, S, H = sequence_output.shape
    Hx, Mp, Lp, L = dims["Hx"], dims["Mp"], dims["Lp"], dims["L"]

    # ---- batch tile: large (amortize grid-step overhead + weight pushes),
    # but keep >=2 grid steps when the batch allows so v7x's 2 TCs both work.
    TB = min(block_b, max(8, _round_up(_cdiv(B, 2), 8)))
    TB = _round_up(TB, 8)
    grid_b = _cdiv(B, TB)
    Bp = grid_b * TB

    # ---- x stream
    if B == Bp and S * H >= Hx:
        # Zero-copy path: free contiguous reshape; BlockSpec streams a strided
        # (TB, Hx) f32 slab per step whose first H lanes are the CLS token.
        x2d = sequence_output.reshape(B, S * H)
    else:
        # Ragged-batch / tiny-model fallback: slice + cast + pad only the small
        # [B, H] CLS slab (never materializes the full [B, S, H] tensor).
        x_cls = sequence_output[:, 0, :].astype(jnp.bfloat16)
        x2d = jnp.zeros((Bp, Hx), jnp.bfloat16).at[:B, :H].set(x_cls)

    itemsize_x = x2d.dtype.itemsize

    # ---- tight VMEM budget: 2x-buffered weights/biases/x/out tiles + f32/bf16
    # intermediates (h1, h2, logits) + 2x headroom, capped at 32 MiB.
    weight_bytes = 2 * (Hx * Mp + Mp * Mp + Mp * Lp)          # bf16, single copy
    bias_bytes = 4 * (2 * Mp + Lp)
    x_tile = TB * Hx * itemsize_x
    out_tile = TB * Lp * 4
    interm = TB * Mp * (4 + 2 + 2) + TB * Lp * 4
    needed = 2 * (weight_bytes + bias_bytes + x_tile + out_tile) + interm
    vmem_limit = int(min(max(2 * needed, 8 * 1024 * 1024), 32 * 1024 * 1024))

    cost = pl.CostEstimate(
        flops=2 * Bp * (Hx * Mp + Mp * Mp + Mp * Lp),
        transcendentals=Bp * Lp,
        bytes_accessed=Bp * Hx * itemsize_x + Bp * Lp * 4 + weight_bytes + bias_bytes,
    )

    out_p = pl.pallas_call(
        qwen_mlp_head_kernel,
        out_shape=jax.ShapeDtypeStruct((Bp, Lp), jnp.float32),
        grid=(grid_b,),
        in_specs=[
            pl.BlockSpec((TB, Hx), lambda i: (i, 0)),   # x: tiled over batch
            pl.BlockSpec((Hx, Mp), lambda i: (0, 0)),   # w1: resident
            pl.BlockSpec((1, Mp), lambda i: (0, 0)),    # b1: resident
            pl.BlockSpec((Mp, Mp), lambda i: (0, 0)),   # w2: resident
            pl.BlockSpec((1, Mp), lambda i: (0, 0)),    # b2: resident
            pl.BlockSpec((Mp, Lp), lambda i: (0, 0)),   # w3: resident
            pl.BlockSpec((1, Lp), lambda i: (0, 0)),    # b3: resident
        ],
        out_specs=pl.BlockSpec((TB, Lp), lambda i: (i, 0)),
        compiler_params=pltpu.CompilerParams(
            dimension_semantics=("parallel",),
            vmem_limit_bytes=vmem_limit,
        ),
        cost_estimate=cost,
    )(x2d, w1_p, b1_p, w2_p, b2_p, w3_p, b3_p)

    return out_p[:B, :L]


def init_params(key, hidden_dim, mlp_dim, labels_count):
    k1, k2, k3 = jax.random.split(key, 3)
    w1 = jax.random.normal(k1, (hidden_dim, mlp_dim), jnp.float32) * (1.0 / hidden_dim ** 0.5)
    b1 = jnp.zeros((1, mlp_dim), jnp.float32)
    w2 = jax.random.normal(k2, (mlp_dim, mlp_dim), jnp.float32) * (1.0 / mlp_dim ** 0.5)
    b2 = jnp.zeros((1, mlp_dim), jnp.float32)
    w3 = jax.random.normal(k3, (mlp_dim, labels_count), jnp.float32) * (1.0 / mlp_dim ** 0.5)
    b3 = jnp.zeros((1, labels_count), jnp.float32)
    return (w1, b1, w2, b2, w3, b3)


def reference(sequence_output, params):
    w1, b1, w2, b2, w3, b3 = params
    x = sequence_output[:, 0, :]
    h = jnp.maximum(x @ w1 + b1, 0.0)
    h = jnp.maximum(h @ w2 + b2, 0.0)
    logits = h @ w3 + b3
    return jax.nn.softmax(logits, axis=1)


if __name__ == "__main__":
    # Small shapes consistent with the module (hidden_dim=1024 -> 32,
    # mlp_dim=256 -> 16, labels_count -> 4, seq=8).
    S, H, M, L = 8, 32, 16, 4

    key = jax.random.PRNGKey(0)
    k_params, k_seq_a, k_seq_b = jax.random.split(key, 3)

    params = init_params(k_params, H, M, L)
    # Weight pad/cast hoisted out of the per-call path (done once here).
    prepared, dims = prepare_params(params, seq_len=S)

    # B=16 exercises the zero-copy CLS path with a 2-step grid;
    # B=2 exercises the ragged-batch fallback path.
    for B, k in ((16, k_seq_a), (2, k_seq_b)):
        # Stand-in for the Qwen backbone's sequence output.
        sequence_output = jax.random.normal(k, (B, S, H), jnp.float32)
        out = jax.block_until_ready(qwen_mlp_head(sequence_output, prepared, dims))
        ref = reference(sequence_output, params)
        assert out.shape == (B, L)
        # bf16 MXU operands + approx reciprocal -> looser tolerances than f32.
        assert jnp.allclose(out, ref, atol=3e-2, rtol=3e-2)
        assert jnp.allclose(jnp.sum(out, axis=1), 1.0, atol=1e-2)

    print("KERNEL_OK")
</pallas_src>

<mosaic_0001>
module attributes {stable_mosaic.version = 11 : i64} {
  func.func @qwen_mlp_head_kernel(%arg0: i32, %arg1: memref<8x128xf32, #tpu.memory_space<vmem>>, %arg2: memref<128x128xbf16, #tpu.memory_space<vmem>>, %arg3: memref<1x128xf32, #tpu.memory_space<vmem>>, %arg4: memref<128x128xbf16, #tpu.memory_space<vmem>>, %arg5: memref<1x128xf32, #tpu.memory_space<vmem>>, %arg6: memref<128x128xbf16, #tpu.memory_space<vmem>>, %arg7: memref<1x128xf32, #tpu.memory_space<vmem>>, %arg8: memref<8x128xf32, #tpu.memory_space<vmem>>) attributes {dimension_semantics = [#tpu.dimension_semantics<parallel>], iteration_bounds = array<i64: 2>, scalar_prefetch = 0 : i64, scratch_operands = 0 : i64, tpu.core_type = #tpu.core_type<tc>, window_params = [{transform_indices = @transform_0, window_bounds = array<i64: 8, 128>}, {pipeline_mode = #tpu.pipeline_mode<synchronous>, transform_indices = @transform_1, window_bounds = array<i64: 128, 128>}, {pipeline_mode = #tpu.pipeline_mode<synchronous>, transform_indices = @transform_2, window_bounds = array<i64: 1, 128>}, {pipeline_mode = #tpu.pipeline_mode<synchronous>, transform_indices = @transform_3, window_bounds = array<i64: 128, 128>}, {pipeline_mode = #tpu.pipeline_mode<synchronous>, transform_indices = @transform_4, window_bounds = array<i64: 1, 128>}, {pipeline_mode = #tpu.pipeline_mode<synchronous>, transform_indices = @transform_5, window_bounds = array<i64: 128, 128>}, {pipeline_mode = #tpu.pipeline_mode<synchronous>, transform_indices = @transform_6, window_bounds = array<i64: 1, 128>}, {transform_indices = @transform_7, window_bounds = array<i64: 8, 128>}]} {
    %c0 = arith.constant 0 : index
    %c0_0 = arith.constant 0 : index
    %0 = vector.load %arg1[%c0, %c0_0] : memref<8x128xf32, #tpu.memory_space<vmem>>, vector<8x128xf32>
    %1 = arith.truncf %0 : vector<8x128xf32> to vector<8x128xbf16>
    %c0_1 = arith.constant 0 : index
    %c0_2 = arith.constant 0 : index
    %2 = vector.load %arg2[%c0_1, %c0_2] : memref<128x128xbf16, #tpu.memory_space<vmem>>, vector<128x128xbf16>
    %cst = arith.constant dense<0.000000e+00> : vector<8x128xf32>
    %3 = tpu.matmul %1, %2, %cst {dimension_numbers = #tpu.dot_dimension_numbers<[1], [0], [0], [1], [0, 0, 1, 1], [], []>} : vector<8x128xbf16>, vector<128x128xbf16>, vector<8x128xf32> -> vector<8x128xf32>
    %c0_3 = arith.constant 0 : index
    %c0_4 = arith.constant 0 : index
    %4 = vector.load %arg3[%c0_3, %c0_4] : memref<1x128xf32, #tpu.memory_space<vmem>>, vector<1x128xf32>
    %5 = vector.broadcast %4 : vector<1x128xf32> to vector<8x128xf32>
    %6 = arith.addf %3, %5 : vector<8x128xf32>
    %cst_5 = arith.constant 0.000000e+00 : f32
    %7 = vector.broadcast %cst_5 : f32 to vector<8x128xf32>
    %8 = arith.maximumf %6, %7 : vector<8x128xf32>
    %9 = arith.truncf %8 : vector<8x128xf32> to vector<8x128xbf16>
    %c0_6 = arith.constant 0 : index
    %c0_7 = arith.constant 0 : index
    %10 = vector.load %arg4[%c0_6, %c0_7] : memref<128x128xbf16, #tpu.memory_space<vmem>>, vector<128x128xbf16>
    %cst_8 = arith.constant dense<0.000000e+00> : vector<8x128xf32>
    %11 = tpu.matmul %9, %10, %cst_8 {dimension_numbers = #tpu.dot_dimension_numbers<[1], [0], [0], [1], [0, 0, 1, 1], [], []>} : vector<8x128xbf16>, vector<128x128xbf16>, vector<8x128xf32> -> vector<8x128xf32>
    %c0_9 = arith.constant 0 : index
    %c0_10 = arith.constant 0 : index
    %12 = vector.load %arg5[%c0_9, %c0_10] : memref<1x128xf32, #tpu.memory_space<vmem>>, vector<1x128xf32>
    %13 = vector.broadcast %12 : vector<1x128xf32> to vector<8x128xf32>
    %14 = arith.addf %11, %13 : vector<8x128xf32>
    %cst_11 = arith.constant 0.000000e+00 : f32
    %15 = vector.broadcast %cst_11 : f32 to vector<8x128xf32>
    %16 = arith.maximumf %14, %15 : vector<8x128xf32>
    %17 = arith.truncf %16 : vector<8x128xf32> to vector<8x128xbf16>
    %c0_12 = arith.constant 0 : index
    %c0_13 = arith.constant 0 : index
    %18 = vector.load %arg6[%c0_12, %c0_13] : memref<128x128xbf16, #tpu.memory_space<vmem>>, vector<128x128xbf16>
    %cst_14 = arith.constant dense<0.000000e+00> : vector<8x128xf32>
    %19 = tpu.matmul %17, %18, %cst_14 {dimension_numbers = #tpu.dot_dimension_numbers<[1], [0], [0], [1], [0, 0, 1, 1], [], []>} : vector<8x128xbf16>, vector<128x128xbf16>, vector<8x128xf32> -> vector<8x128xf32>
    %c0_15 = arith.constant 0 : index
    %c0_16 = arith.constant 0 : index
    %20 = vector.load %arg7[%c0_15, %c0_16] : memref<1x128xf32, #tpu.memory_space<vmem>>, vector<1x128xf32>
    %21 = vector.broadcast %20 : vector<1x128xf32> to vector<8x128xf32>
    %22 = arith.addf %19, %21 : vector<8x128xf32>
    %cst_17 = arith.constant dense<0xFF800000> : vector<8xf32>
    %23 = vector.multi_reduction <maximumf>, %22, %cst_17 [1] : vector<8x128xf32> to vector<8xf32>
    %24 = vector.shape_cast %23 : vector<8xf32> to vector<8x1xf32>
    %25 = vector.broadcast %24 : vector<8x1xf32> to vector<8x128xf32>
    %26 = arith.subf %22, %25 : vector<8x128xf32>
    %27 = math.exp %26 : vector<8x128xf32>
    %cst_18 = arith.constant dense<0.000000e+00> : vector<8xf32>
    %28 = vector.multi_reduction <add>, %27, %cst_18 [1] : vector<8x128xf32> to vector<8xf32>
    %29 = vector.shape_cast %28 : vector<8xf32> to vector<8x1xf32>
    %30 = tpu.reciprocal %29 {approx = true} : vector<8x1xf32> -> vector<8x1xf32>
    %31 = vector.broadcast %30 : vector<8x1xf32> to vector<8x128xf32>
    %32 = arith.mulf %27, %31 : vector<8x128xf32>
    %c0_19 = arith.constant 0 : index
    %c0_20 = arith.constant 0 : index
    %33 = vector.load %arg8[%c0_19, %c0_20] : memref<8x128xf32, #tpu.memory_space<vmem>>, vector<8x128xf32>
    tpu.vector_store %arg8[%c0_19, %c0_20], %32 {strides = array<i32>} : memref<8x128xf32, #tpu.memory_space<vmem>>, vector<8x128xf32>,
    return
  }
  func.func @transform_0(%arg0: i32) -> (i32, i32) {
    %c0_i32 = arith.constant 0 : i32
    %c0_i32_0 = arith.constant 0 : i32
    return %arg0, %c0_i32 : i32, i32
  }
  func.func @transform_1(%arg0: i32) -> (i32, i32) {
    %c0_i32 = arith.constant 0 : i32
    %c0_i32_0 = arith.constant 0 : i32
    %c0_i32_1 = arith.constant 0 : i32
    return %c0_i32, %c0_i32_0 : i32, i32
  }
  func.func @transform_2(%arg0: i32) -> (i32, i32) {
    %c0_i32 = arith.constant 0 : i32
    %c0_i32_0 = arith.constant 0 : i32
    %c0_i32_1 = arith.constant 0 : i32
    return %c0_i32, %c0_i32_0 : i32, i32
  }
  func.func @transform_3(%arg0: i32) -> (i32, i32) {
    %c0_i32 = arith.constant 0 : i32
    %c0_i32_0 = arith.constant 0 : i32
    %c0_i32_1 = arith.constant 0 : i32
    return %c0_i32, %c0_i32_0 : i32, i32
  }
  func.func @transform_4(%arg0: i32) -> (i32, i32) {
    %c0_i32 = arith.constant 0 : i32
    %c0_i32_0 = arith.constant 0 : i32
    %c0_i32_1 = arith.constant 0 : i32
    return %c0_i32, %c0_i32_0 : i32, i32
  }
  func.func @transform_5(%arg0: i32) -> (i32, i32) {
    %c0_i32 = arith.constant 0 : i32
    %c0_i32_0 = arith.constant 0 : i32
    %c0_i32_1 = arith.constant 0 : i32
    return %c0_i32, %c0_i32_0 : i32, i32
  }
  func.func @transform_6(%arg0: i32) -> (i32, i32) {
    %c0_i32 = arith.constant 0 : i32
    %c0_i32_0 = arith.constant 0 : i32
    %c0_i32_1 = arith.constant 0 : i32
    return %c0_i32, %c0_i32_0 : i32, i32
  }
  func.func @transform_7(%arg0: i32) -> (i32, i32) {
    %c0_i32 = arith.constant 0 : i32
    %c0_i32_0 = arith.constant 0 : i32
    return %arg0, %c0_i32 : i32, i32
  }
}

</mosaic_0001>

<bundles_post_ra>
// kernel: tpu_custom_call.1
= control target key start
LH: loop header
LB: loop body
LE: loop exit
PB: predicated region body
PF: predicated region fallthrough
CT: control target
= control target key end

     0   :  { %s1360_s0 = inlined_call_operand.hbm [shape: f32[16,256], index: 0, kind: input, shape index: {}]   ;;  %s1361_s1 = inlined_call_operand.hbm [shape: bf16[128,128], index: 1, kind: input, shape index: {}]   ;;  %s1362_s2 = inlined_call_operand.vmem [shape: f32[1,128], index: 2, kind: input, shape index: {}]   ;;  %s1363_s3 = inlined_call_operand.hbm [shape: bf16[128,128], index: 3, kind: input, shape index: {}]   ;;  %s1364_s4 = inlined_call_operand.vmem [shape: f32[1,128], index: 4, kind: input, shape index: {}]   ;;  %s1365_s5 = inlined_call_operand.hbm [shape: bf16[128,128], index: 5, kind: input, shape index: {}]   ;;  %s1366_s6 = inlined_call_operand.vmem [shape: f32[1,128], index: 6, kind: input, shape index: {}]   ;;  %s1367_s7 = inlined_call_operand.hbm [shape: f32[16,128], index: 7, kind: output, shape index: {}]  }
   0x1   :  { %1368 = sst [smem:[#allocation15_spill]] %s1361_s1 }
   0x2   :  { %12 = vsyncpa [#allocation3], 0 }
   0x3   :  { %14 = vsyncpa [#allocation3 + $0x1], 0 }
   0x4   :  { %15 = vsyncpa [#allocation6], 0 }
   0x5   :  { %16 = vsyncpa [#allocation9], 0 }
   0x6   :  { %17 = vsyncpa [#allocation4], 0 }
   0x7   :  { %19 = vsyncpa [#allocation4 + $0x1], 0  ;;  %s1188_s24 = smov 0   ;;  %s1190_s25 = smov 0  }
   0x8   :  { %s1192_s26 = smov 0   ;;  %s1194_s27 = smov 0  }
   0x9 LB: > { %s1369_s1 = sld [smem:[#allocation15_spill]]  ;;  %s1212_s8 = sadd.s32 4294967295, %s1141_s27   ;;  %s1141_s27 = sphi %s1194_s27, %s1380_s27   ;;  %s1137_s26 = sphi %s1192_s26, %s1379_s26   ;;  %s1133_s25 = sphi %s1190_s25, %s1378_s25   ;;  %s1129_s24 = sphi %s1188_s24, %s1377_s24  }
   0xa   : > { %p722_p0 = scmp.ge.s32.totalorder %s1141_s27, 1  ;;  %p46_p1 = scmp.eq.s32.totalorder %s1212_s8, 0 }
   0xb   : > { %p208_p2 = scmp.lt.s32.totalorder %s1141_s27, 3  ;;  %s1143_s10 = smov [#allocation5]  }
   0xc   : > { %s221_s11 = sshll.u32 %s1143_s10, 4  ;;  %s236_s14 = sshll.u32 %s1363_s3, 4  ;;  %s222_s11 = int_to_ptr.vmem [resolvable:$true] %s221_s11  ;;  %s237_s14 = int_to_ptr.hbm [resolvable:$true] %s236_s14 }
   0xd   : > { %p1217_p3 = pnand %p722_p0, %p208_p2  ;;  %s253_s18 = sshll.u32 %s1365_s5, 4  ;;  %s254_s18 = int_to_ptr.hbm [resolvable:$true] %s253_s18 }
   0xe   : > { %s1144_s19 = smov [#allocation7]   ;;  %s1145_s21 = smov 64  }
   0xf   : > { %s219_s30 = sshll.u32 %s1369_s1, 4  ;;  %p877_p4 = pneg %p1217_p3  ;;  %s220_s30 = int_to_ptr.hbm [resolvable:$true] %s219_s30 }
  0x10   : > { %s238_s20 = sshll.u32 %s1144_s19, 4  ;;  %s1146_s22 = smov 4   ;;  %s239_s20 = int_to_ptr.vmem [resolvable:$true] %s238_s20 }
  0x11   : > { %p1229_p6 = pnand %p877_p4, %p46_p1  ;;  %s1147_s23 = smov [#allocation8]  }
  0x12   : > { %s255_s28 = sshll.u32 %s1147_s23, 4  ;;  %s721_s29 = sadd.s32 4294967294, %s1141_s27   ;;  %s256_s28 = int_to_ptr.vmem [resolvable:$true] %s255_s28 }
  0x13   : > { %880 = dma.hbm_to_vmem [thread:$0]  (!%p1229_p6), %s220_s30, 1024, %s222_s11, [#allocation6], %s1145_s21, %s1145_s21, %s1146_s22  }
  0x14   : > { %883 = dma.hbm_to_vmem [thread:$0]  (!%p1229_p6), %s237_s14, 1024, %s239_s20, [#allocation6], %s1145_s21, %s1145_s21, %s1146_s22  }
  0x15   : > { %886 = dma.hbm_to_vmem [thread:$0]  (!%p1229_p6), %s254_s18, 1024, %s256_s28, [#allocation9], %s1145_s21, %s1145_s21, %s1146_s22  }
  0x16   : > { %s1244_s10 = sadd.s32 1, %s1141_s27   ;;  %s32_s12 = sadd.s32 1, %s1137_s26 }
  0x17   : > { %s29_s30 = ssub.s32 %s1141_s27, %s1244_s10  ;;  %p39_p7 = scmp.ne.s32.totalorder %s1137_s26, %s1133_s25 }
  0x18   : > { %p30_p8 = scmp.eq.s32.totalorder %s29_s30, 0  ;;  %p40_p9 = scmp.eq.s32.totalorder %s1141_s27, 0 }
  0x19   : > { %p45_p10 = scmp.ne.s32.totalorder %s1133_s25, %s1129_s24  ;;  %p195_p11 = scmp.eq.s32.totalorder %s1212_s8, 1 }
  0x1a   : > { %s1256_s11 = scalar_select %p30_p8, %s1137_s26, %s32_s12  }
  0x1b   : > { %p1260_p12 = por %p46_p1, %p45_p10  ;;  %p1264_p13 = por %p195_p11, %p39_p7 }
  0x1c   : > { %p201_p0 = scmp.eq.s32.totalorder %s721_s29, 1  ;;  %p41_p2 = por %p40_p9, %p39_p7 }
  0x1d   : > { %s272_s15 = sand.u32 1, %s1137_s26   ;;  %p898_p6 = scmp.lt.s32.totalorder %s1141_s27, 2 }
  0x1e   : > { %p1269_p4 = por %p201_p0, %p45_p10  ;;  %s727_s17 = sshll.u32 %s272_s15, 3 }
  0x1f   : > { %s836_s18 = sshll.u32 %s1141_s27, 4  ;;  %s276_s23 = scalar_lea.vmem [#allocation2], %s727_s17 }
  0x20   : > { %s281_s21 = scalar_lea.hbm %s1360_s0, %s836_s18  ;;  %s285_s28 = sshll.u32 %s276_s23, 4  ;;  %s286_s28 = int_to_ptr.vmem [resolvable:$true] %s285_s28 }
  0x21   : > { %s283_s22 = sshll.u32 %s281_s21, 4  ;;  %p1278_p8 = pnand %p898_p6, %p41_p2  ;;  %s284_s22 = int_to_ptr.hbm [resolvable:$true] %s283_s22 }
  0x22   : > { %s273_s12 = scalar_lea.sflag [#allocation3], %s272_s15  ;;  %s1037_s30 = sshra.s32 %s284_s22, 4  ;;  %s1038_s30 = int_to_ptr.hbm [resolvable:$true] %s1037_s30 }
  0x23   : > { %s1039_s1 = scalar_lea.hbm %s1038_s30, 8  ;;  %p1041_p9 = pneg %p1278_p8 }
  0x24   : > { %p1040_p7 = scmp.ne.s32.totalorder %s1038_s30, %s1039_s1  ;;  %s1044_s17 = scalar_lea.hbm %s1360_s0, 32 }
  0x25   : > { %p1045_p0 = scmp.lt.s32.totalorder %s1038_s30, %s1360_s0  ;;  %p1046_p2 = scmp.lt.s32.totalorder %s1044_s17, %s1039_s1 }
  0x26   : > { %p1042_p10 = pnand %p1041_p9, %p1040_p7 }
  0x27   : > { %p1047_p6 = por %p1046_p2, %p1045_p0 }
  0x28   : > { %p1043_p11 = pneg %p1042_p10 }
  0x2a   : > { %p1048_p5 = pnand %p1047_p6, %p1043_p11 }
  0x2c   : > { %1051 = shalt.err (!%p1048_p5)
}
  0x2d   : > { %890 = dma.hbm_to_vmem [thread:$0]  (!%p1278_p8), %s284_s22, 128, %s286_s28, %s273_s12  }
  0x2e   : > { %294 = sbr.rel (%p1217_p3) target bundleno = 741 (0x2e5), region = 48  ;;  %s1295_s15 = sand.u32 (!%p1217_p3), 1, %s1133_s25  }
  0x2f   : > { %s731_s23 = sshll.u32 (!%p1217_p3), %s1295_s15, 3  ;;  %s297_s18 = scalar_lea.sflag (!%p1217_p3), [#allocation3], %s1295_s15 }
  0x30   : > { %s1301_s1 = scalar_lea.vmem (!%p1217_p3), [#allocation2], %s731_s23 }
  0x33   : > { %1112 = dma.done.wait (%p1260_p12), %s297_s18, 128  }
  0x34   : > { %1114 = vsyncadd (%p1260_p12), %s297_s18, 4294967168 }
  0x35   : > { %1116 = dma.done.wait (%p46_p1), [#allocation6], 2048  }
  0x36   : > { %1118 = vsyncadd (%p46_p1), [#allocation6], 4294965248 }
  0x37   : > { %1120 = dma.done.wait (%p46_p1), [#allocation9], 1024  }
  0x38   : > { %1122 = vsyncadd (%p46_p1), [#allocation9], 4294966272  ;;  %v844_v0 = vld [vmem:[#allocation5 + $0x38] sm:$0xff]  ;;  %v843_v1 = vld [vmem:[#allocation5 + $0x30] sm:$0xff]  ;;  %s833_s30 = sshll.u32 %s1212_s8, 3  ;;  %s346_s21 = scalar_lea.vmem [#allocation10], %s731_s23 }
  0x39   : > { %417 = vmatpush.bf16.msra.mxu0 %v844_v0  ;;  %v852_v2 = vld [vmem:[#allocation7 + $0x38] sm:$0xff]  ;;  %v851_v3 = vld [vmem:[#allocation7 + $0x30] sm:$0xff]  ;;  %v842_v4 = vld [vmem:[#allocation5 + $0x28] sm:$0xff]  ;;  %s617_s20 = scalar_lea.hbm %s1367_s7, %s833_s30  ;;  %s619_s18 = sshll.u32 %s346_s21, 4  ;;  %s620_s18 = int_to_ptr.vmem [resolvable:$true] %s619_s18 }
  0x3a   : > { %500 = vmatpush.bf16.msra.mxu1 %v852_v2  ;;  %v850_v5 = vld [vmem:[#allocation7 + $0x28] sm:$0xff]  ;;  %v841_v6 = vld [vmem:[#allocation5 + $0x20] sm:$0xff]  ;;  %v840_v8 = vld [vmem:[#allocation5 + $0x18] sm:$0xff]  ;;  %s607_s9 = scalar_lea.sflag [#allocation4], %s1295_s15  ;;  %s1087_s29 = scalar_lea.hbm %s1367_s7, 16 }
  0x3b   : > { %v849_v7 = vld [vmem:[#allocation7 + $0x20] sm:$0xff]  ;;  %v848_v9 = vld [vmem:[#allocation7 + $0x18] sm:$0xff]  ;;  %v839_v10 = vld [vmem:[#allocation5 + $0x10] sm:$0xff] }
  0x3c   : > { %v847_v11 = vld [vmem:[#allocation7 + $0x10] sm:$0xff]  ;;  %v838_v12 = vld [vmem:[#allocation5 + $0x8] sm:$0xff]  ;;  %v837_v13 = vld [vmem:[#allocation5] sm:$0xff] }
  0x3d   : > { %418 = vmatpush.bf16.msra.mxu0 %v843_v1  ;;  %v347_v14 = vld [vmem:[%s1301_s1] sm:$0xff]  ;;  %v846_v16 = vld [vmem:[#allocation7 + $0x8] sm:$0xff]  ;;  %v845_v17 = vld [vmem:[#allocation7] sm:$0xff]  ;;  %s621_s1 = sshll.u32 %s617_s20, 4  ;;  %s622_s1 = int_to_ptr.hbm [resolvable:$true] %s621_s1 }
  0x3e   : > { %501 = vmatpush.bf16.msra.mxu1 %v851_v3  ;;  %v348_v15 = vpack.c.bf16 %v347_v14, %v347_v14  ;;  %v860_v18 = vld [vmem:[#allocation8 + $0x38] sm:$0xff]  ;;  %v859_v19 = vld [vmem:[#allocation8 + $0x30] sm:$0xff]  ;;  %v858_v20 = vld [vmem:[#allocation8 + $0x28] sm:$0xff]  ;;  %s1081_s13 = sshra.s32 %s622_s1, 4  ;;  %s1082_s13 = int_to_ptr.hbm [resolvable:$true] %s1081_s13 }
  0x3f   : > { %583 = vmatpush.bf16.msra.mxu2 %v860_v18  ;;  %v857_v21 = vld [vmem:[#allocation8 + $0x20] sm:$0xff]  ;;  %v856_v22 = vld [vmem:[#allocation8 + $0x18] sm:$0xff]  ;;  %v855_v23 = vld [vmem:[#allocation8 + $0x10] sm:$0xff]  ;;  %s1083_s8 = scalar_lea.hbm %s1082_s13, 8  ;;  %p1088_p12 = scmp.lt.s32.totalorder %s1082_s13, %s1367_s7 }
  0x40   : > { %v940_v24 = vld [vmem:[%s1362_s2] ss:$0 sm:$0xff]  ;;  %v854_v30 = vld [vmem:[#allocation8 + $0x8] sm:$0xff]  ;;  %v853_v31 = vld [vmem:[#allocation8] sm:$0xff]  ;;  %p1084_p1 = scmp.ne.s32.totalorder %s1082_s13, %s1083_s8  ;;  %p1089_p8 = scmp.lt.s32.totalorder %s1087_s29, %s1083_s8 }
  0x41   : > { %419 = vmatpush.bf16.msra.mxu0 %v842_v4  ;;  %v941_v32 = vld [vmem:[%s1364_s4] ss:$0 sm:$0xff] }
  0x42   : > { %502 = vmatpush.bf16.msra.mxu1 %v850_v5  ;;  %v942_v38 = vld [vmem:[%s1366_s6] ss:$0 sm:$0xff]  ;;  %p1085_p3 = pnand %p1084_p1, %p1264_p13  ;;  %p1090_p7 = por %p1089_p8, %p1088_p12 }
  0x43   : > { %584 = vmatpush.bf16.msra.mxu2 %v859_v19 }
  0x44   : > { %p1086_p5 = pneg %p1085_p3 }
  0x45   : > { %420 = vmatpush.bf16.msra.mxu0 %v841_v6 }
  0x46   : > { %503 = vmatpush.bf16.msra.mxu1 %v849_v7  ;;  %p1091_p9 = pnand %p1090_p7, %p1086_p5 }
  0x47   : > { %585 = vmatpush.bf16.msra.mxu2 %v858_v20 }
  0x49   : > { %421 = vmatpush.bf16.msra.mxu0 %v840_v8 }
  0x4a   : > { %504 = vmatpush.bf16.msra.mxu1 %v848_v9 }
  0x4b   : > { %586 = vmatpush.bf16.msra.mxu2 %v857_v21 }
  0x4d   : > { %422 = vmatpush.bf16.msra.mxu0 %v839_v10 }
  0x4e   : > { %505 = vmatpush.bf16.msra.mxu1 %v847_v11 }
  0x4f   : > { %587 = vmatpush.bf16.msra.mxu2 %v856_v22 }
  0x51   : > { %423 = vmatpush.bf16.msra.mxu0 %v838_v12 }
  0x52   : > { %506 = vmatpush.bf16.msra.mxu1 %v846_v16 }
  0x53   : > { %588 = vmatpush.bf16.msra.mxu2 %v855_v23 }
  0x55   : > { %424 = vmatpush.bf16.msra.mxu0 %v837_v13 }
  0x56   : > { %507 = vmatpush.bf16.msra.mxu1 %v845_v17 }
  0x57   : > { %589 = vmatpush.bf16.msra.mxu2 %v854_v30 }
  0x58   : > { %425 = vmatmul.bf16.vlgmr.msra.gmra.mxu0 %v348_v15 }
  0x5b   : > { %590 = vmatpush.bf16.msra.mxu2 %v853_v31 }
  0xd5   : > { %v426_v25 = vpop.f32.mrf.mxu0 }
  0xd6   : > { %v427_v26 = vadd.f32 %v940_v24, %v426_v25 }
  0xd8   : > { %v430_v27 = vmax.f32 %v427_v26, 0.0 }
  0xda   : > { %v431_v28 = vpack.c.bf16 %v430_v27, %v430_v27 }
  0xdc   : > { %508 = vmatmul.bf16.vlgmr.msra.gmra.mxu1 %v431_v28 }
  0xdd   : > { %v428_v29 = vpop.f32.mrf.mxu0 }
 0x159   : > { %v509_v33 = vpop.f32.mrf.mxu1 }
 0x15a   : > { %v510_v34 = vadd.f32 %v941_v32, %v509_v33 }
 0x15c   : > { %v513_v35 = vmax.f32 %v510_v34, 0.0 }
 0x15e   : > { %v514_v36 = vpack.c.bf16 %v513_v35, %v513_v35 }
 0x160   : > { %591 = vmatmul.bf16.vlgmr.msra.gmra.mxu2 %v514_v36 }
 0x161   : > { %v511_v37 = vpop.f32.mrf.mxu1 }
 0x1e3   : > { %v592_v39 = vpop.f32.mrf.mxu2 }
 0x1e4   : > { %v593_v40 = vadd.f32 %v942_v38, %v592_v39 }
 0x1e6   : > { %596 = vmax.xlane.f32.xlu0 %v593_v40 }
 0x1eb   : > { %v594_v41 = vpop.f32.mrf.mxu2 }
 0x259   : > { %v597_v42 = vpop.xlane.xlu0 %596 }
 0x25a   : > { %v598_v43 = vsub.f32 %v593_v40, %v597_v42 }
 0x25c   : > { %v599_v44 = vmul.f32 1.442695, %v598_v43 }
 0x25e   : > { %943 = vpow2.f32 %v599_v44 }
 0x264   : > { %v944_v45 = vpop.eup %943 }
 0x265   : > { %601 = vadd.xlane.f32.xlu0 %v944_v45 }
 0x2d8   : > { %v602_v46 = vpop.xlane.xlu0 %601 }
 0x2d9   : > { %945 = vrcp.f32 %v602_v46 }
 0x2df   : > { %v946_v47 = vpop.eup %945 }
 0x2e0   : > { %v604_v48 = vmul.f32 %v946_v47, %v944_v45 }
 0x2e2   : > { %605 = vst [vmem:[%s346_s21] sm:$0xff] %v604_v48 }
 0x2e3   : > { %1094 = shalt.err (!%p1091_p9)
}
 0x2e4   : > { %875 = dma.vmem_to_hbm [thread:$0]  (%p1264_p13), %s620_s18, 128, %s622_s1, %s607_s9  }
 0x2e5 PF: > { %s633_s15 = sand.u32 1, %s1129_s24   ;;  %p1376_p10 = scmp.ge.s32.totalorder %s1141_s27, 2 }
 0x2e6   : > { %s634_s30 = scalar_lea.sflag [#allocation4], %s633_s15 }
 0x2e7   : > { %p892_p11 = pnand %p1376_p10, %p1269_p4 }
 0x2e9   : > { %p893_p0 = pneg %p892_p11 }
 0x2eb   : > { %1124 = dma.done.wait (%p893_p0), %s634_s30, 128  }
 0x2ec   : > { %1126 = vsyncadd (%p893_p0), %s634_s30, 4294967168  ;;  %p22_p2 = scmp.ge.s32.totalorder %s1244_s10, 4   ;;  %s1377_s24 = smov %s1133_s25 }
 0x2ed   : > { %s1378_s25 = smov %s1137_s26  ;;  %s1379_s26 = smov %s1256_s11 }
 0x2ee   : > { %s1380_s27 = smov %s1244_s10  ;;  %24 = sbr.rel (!%p22_p2) target bundleno = 9 (0x9), region = 105 }
 0x2f3   :  { %640 = vsyncpa [#allocation3], 1 }
 0x2f4   :  { %642 = vsyncpa [#allocation3 + $0x1], 1 }
 0x2f5   :  { %643 = vsyncpa [#allocation6], 1 }
 0x2f6   :  { %644 = vsyncpa [#allocation9], 1 }
 0x2f7   :  { %645 = vsyncpa [#allocation4], 1 }
 0x2f8   :  { %647 = vsyncpa [#allocation4 + $0x1], 1 }

</bundles_post_ra>
